<compile_context>
chip_gen: v6e
topology: v6e:2x2x1
jax: 0.10.0
libtpu: 0.0.40
codegen_flags: <defaults>
</compile_context>

<pallas_src>
import jax
import jax.numpy as jnp
from jax.experimental import pallas as pl
from jax.experimental.pallas import tpu as pltpu


def _outconv_vpu_kernel(x_ref, w_ref, b_ref, o_ref):
    """Tiny-channel path: unrolled broadcast-MACs on the VPU.

    x_ref: (1, Cin, ts) VMEM
    w_ref: (Cout, Cin)  SMEM (scalar reads)
    b_ref: (Cout,)      SMEM (scalar reads)
    o_ref: (1, Cout, ts) VMEM
    """
    cin = x_ref.shape[1]
    cout = o_ref.shape[1]
    x = x_ref[0].astype(jnp.float32)          # (Cin, ts), lane-dense
    rows = []
    for o in range(cout):
        acc = x[0:1, :] * w_ref[o, 0]
        for c in range(1, cin):
            acc = acc + x[c:c + 1, :] * w_ref[o, c]
        rows.append(acc + b_ref[o])
    y = jnp.concatenate(rows, axis=0)          # (Cout, ts)
    o_ref[0] = y.astype(o_ref.dtype)


def _outconv_mxu_kernel(x_ref, w_ref, b_ref, o_ref):
    """Large-channel path: (Cout,Cin) @ (Cin,ts) on the MXU.

    x_ref: (1, Cin, ts) VMEM
    w_ref: (Cout, Cin)  VMEM (resident across grid)
    b_ref: (Cout, 1)    VMEM (resident across grid)
    o_ref: (1, Cout, ts) VMEM
    """
    acc = jnp.dot(w_ref[...], x_ref[0], preferred_element_type=jnp.float32)
    o_ref[0] = (acc + b_ref[...]).astype(o_ref.dtype)


def _pick_spatial_tile(hw, cap=8192):
    """Largest multiple of 128 that divides hw, capped; else full extent."""
    if hw % 128 != 0:
        return hw                      # full-extent block is always legal
    ts = min(hw, cap)
    ts -= ts % 128
    while hw % ts != 0:
        ts -= 128
    return ts


def out_conv(x, weight, bias, *, spatial_tile_cap=8192):
    """1x1 Conv2d (NCHW), equivalent to nn.Conv2d(Cin, Cout, kernel_size=1).

    x:      (N, Cin, H, W)
    weight: (Cout, Cin, 1, 1)   -- PyTorch Conv2d weight layout
    bias:   (Cout,)
    returns (N, Cout, H, W)
    """
    N, Cin, H, W = x.shape
    Cout = weight.shape[0]
    HW = H * W
    ts = _pick_spatial_tile(HW, spatial_tile_cap)

    x3 = x.reshape(N, Cin, HW)                 # free reshape, stays NCHW
    w2 = weight.reshape(Cout, Cin)

    grid = (N, HW // ts)
    x_spec = pl.BlockSpec((1, Cin, ts), lambda n, j: (n, 0, j))
    o_spec = pl.BlockSpec((1, Cout, ts), lambda n, j: (n, 0, j))
    out_shape = jax.ShapeDtypeStruct((N, Cout, HW), x.dtype)

    # Budget VMEM explicitly (matters on v7x: 64 MiB physical / 32 MiB scoped).
    itemsize = jnp.dtype(x.dtype).itemsize
    tile_bytes = (Cin + Cout) * ts * itemsize
    vmem_limit = int(min(max(4 * tile_bytes + (1 << 20), 8 << 20), 32 << 20))
    cparams = pltpu.CompilerParams(
        dimension_semantics=("parallel", "parallel"),
        vmem_limit_bytes=vmem_limit,
    )

    if Cin <= 16 and Cout <= 16:
        # Tiny channels: keep the kernel purely DMA/VPU-bound, no MXU.
        y3 = pl.pallas_call(
            _outconv_vpu_kernel,
            out_shape=out_shape,
            grid_spec=pl.GridSpec(
                grid=grid,
                in_specs=[
                    x_spec,
                    pl.BlockSpec(memory_space=pltpu.MemorySpace.SMEM),
                    pl.BlockSpec(memory_space=pltpu.MemorySpace.SMEM),
                ],
                out_specs=o_spec,
            ),
            compiler_params=cparams,
        )(x3, w2.astype(jnp.float32), bias.astype(jnp.float32))
    else:
        y3 = pl.pallas_call(
            _outconv_mxu_kernel,
            out_shape=out_shape,
            grid_spec=pl.GridSpec(
                grid=grid,
                in_specs=[
                    x_spec,
                    pl.BlockSpec((Cout, Cin), lambda n, j: (0, 0)),
                    pl.BlockSpec((Cout, 1), lambda n, j: (0, 0)),
                ],
                out_specs=o_spec,
            ),
            compiler_params=cparams,
        )(x3, w2.astype(x.dtype), bias.reshape(Cout, 1).astype(jnp.float32))

    return y3.reshape(N, Cout, H, W)


if __name__ == "__main__":
    # OutConv(in_channels=4, out_channels=3) on x of shape (2, 4, 16, 16)
    in_channels, out_channels = 4, 3
    N, H, W = 2, 16, 16

    key = jax.random.PRNGKey(0)
    kx, kw, kb = jax.random.split(key, 3)

    x = jax.random.normal(kx, (N, in_channels, H, W), dtype=jnp.float32)
    # Deterministic synthetic params (PyTorch Conv2d shapes: (Cout,Cin,1,1), (Cout,))
    weight = jax.random.normal(kw, (out_channels, in_channels, 1, 1), dtype=jnp.float32) * 0.1
    bias = jax.random.normal(kb, (out_channels,), dtype=jnp.float32) * 0.1

    y = out_conv(x, weight, bias)
    y = jax.block_until_ready(y)

    # Reference: 1x1 conv == channel-wise einsum + bias
    y_ref = jnp.einsum("nchw,oc->nohw", x, weight.reshape(out_channels, in_channels)) \
            + bias.reshape(1, out_channels, 1, 1)

    assert y.shape == (N, out_channels, H, W), y.shape
    assert jnp.allclose(y, y_ref, atol=1e-5, rtol=1e-5), float(jnp.max(jnp.abs(y - y_ref)))
    print("KERNEL_OK")
</pallas_src>

<mosaic_0001>
module attributes {stable_mosaic.version = 11 : i64} {
  func.func @_outconv_vpu_kernel(%arg0: i32, %arg1: i32, %arg2: memref<1x4x256xf32, #tpu.memory_space<vmem>>, %arg3: memref<3x4xf32, #tpu.memory_space<smem>>, %arg4: memref<3xf32, #tpu.memory_space<smem>>, %arg5: memref<1x3x256xf32, #tpu.memory_space<vmem>>) attributes {dimension_semantics = [#tpu.dimension_semantics<parallel>, #tpu.dimension_semantics<parallel>], iteration_bounds = array<i64: 2, 1>, scalar_prefetch = 0 : i64, scratch_operands = 0 : i64, tpu.core_type = #tpu.core_type<tc>, window_params = [{transform_indices = @transform_0, window_bounds = array<i64: 1, 4, 256>}, {transform_indices = @transform_1, window_bounds = array<i64: 3, 4>}, {transform_indices = @transform_2, window_bounds = array<i64: 3>}, {transform_indices = @transform_3, window_bounds = array<i64: 1, 3, 256>}]} {
    %c0 = arith.constant 0 : index
    %c0_0 = arith.constant 0 : index
    %c0_1 = arith.constant 0 : index
    %0 = vector.load %arg2[%c0, %c0_0, %c0_1] : memref<1x4x256xf32, #tpu.memory_space<vmem>>, vector<1x4x256xf32>
    %1 = vector.shape_cast %0 : vector<1x4x256xf32> to vector<4x256xf32>
    %2 = vector.extract_strided_slice %1 {offsets = [0, 0], sizes = [1, 256], strides = [1, 1]} : vector<4x256xf32> to vector<1x256xf32>
    %c0_2 = arith.constant 0 : index
    %c0_3 = arith.constant 0 : index
    %3 = memref.load %arg3[%c0_2, %c0_3] : memref<3x4xf32, #tpu.memory_space<smem>>
    %4 = vector.broadcast %3 : f32 to vector<1x256xf32>
    %5 = arith.mulf %2, %4 : vector<1x256xf32>
    %6 = vector.extract_strided_slice %1 {offsets = [1, 0], sizes = [1, 256], strides = [1, 1]} : vector<4x256xf32> to vector<1x256xf32>
    %c0_4 = arith.constant 0 : index
    %c1 = arith.constant 1 : index
    %7 = memref.load %arg3[%c0_4, %c1] : memref<3x4xf32, #tpu.memory_space<smem>>
    %8 = vector.broadcast %7 : f32 to vector<1x256xf32>
    %9 = arith.mulf %6, %8 : vector<1x256xf32>
    %10 = arith.addf %5, %9 : vector<1x256xf32>
    %11 = vector.extract_strided_slice %1 {offsets = [2, 0], sizes = [1, 256], strides = [1, 1]} : vector<4x256xf32> to vector<1x256xf32>
    %c0_5 = arith.constant 0 : index
    %c2 = arith.constant 2 : index
    %12 = memref.load %arg3[%c0_5, %c2] : memref<3x4xf32, #tpu.memory_space<smem>>
    %13 = vector.broadcast %12 : f32 to vector<1x256xf32>
    %14 = arith.mulf %11, %13 : vector<1x256xf32>
    %15 = arith.addf %10, %14 : vector<1x256xf32>
    %16 = vector.extract_strided_slice %1 {offsets = [3, 0], sizes = [1, 256], strides = [1, 1]} : vector<4x256xf32> to vector<1x256xf32>
    %c0_6 = arith.constant 0 : index
    %c3 = arith.constant 3 : index
    %17 = memref.load %arg3[%c0_6, %c3] : memref<3x4xf32, #tpu.memory_space<smem>>
    %18 = vector.broadcast %17 : f32 to vector<1x256xf32>
    %19 = arith.mulf %16, %18 : vector<1x256xf32>
    %20 = arith.addf %15, %19 : vector<1x256xf32>
    %c0_7 = arith.constant 0 : index
    %21 = memref.load %arg4[%c0_7] : memref<3xf32, #tpu.memory_space<smem>>
    %22 = vector.broadcast %21 : f32 to vector<1x256xf32>
    %23 = arith.addf %20, %22 : vector<1x256xf32>
    %24 = vector.extract_strided_slice %1 {offsets = [0, 0], sizes = [1, 256], strides = [1, 1]} : vector<4x256xf32> to vector<1x256xf32>
    %c1_8 = arith.constant 1 : index
    %c0_9 = arith.constant 0 : index
    %25 = memref.load %arg3[%c1_8, %c0_9] : memref<3x4xf32, #tpu.memory_space<smem>>
    %26 = vector.broadcast %25 : f32 to vector<1x256xf32>
    %27 = arith.mulf %24, %26 : vector<1x256xf32>
    %28 = vector.extract_strided_slice %1 {offsets = [1, 0], sizes = [1, 256], strides = [1, 1]} : vector<4x256xf32> to vector<1x256xf32>
    %c1_10 = arith.constant 1 : index
    %c1_11 = arith.constant 1 : index
    %29 = memref.load %arg3[%c1_10, %c1_11] : memref<3x4xf32, #tpu.memory_space<smem>>
    %30 = vector.broadcast %29 : f32 to vector<1x256xf32>
    %31 = arith.mulf %28, %30 : vector<1x256xf32>
    %32 = arith.addf %27, %31 : vector<1x256xf32>
    %33 = vector.extract_strided_slice %1 {offsets = [2, 0], sizes = [1, 256], strides = [1, 1]} : vector<4x256xf32> to vector<1x256xf32>
    %c1_12 = arith.constant 1 : index
    %c2_13 = arith.constant 2 : index
    %34 = memref.load %arg3[%c1_12, %c2_13] : memref<3x4xf32, #tpu.memory_space<smem>>
    %35 = vector.broadcast %34 : f32 to vector<1x256xf32>
    %36 = arith.mulf %33, %35 : vector<1x256xf32>
    %37 = arith.addf %32, %36 : vector<1x256xf32>
    %38 = vector.extract_strided_slice %1 {offsets = [3, 0], sizes = [1, 256], strides = [1, 1]} : vector<4x256xf32> to vector<1x256xf32>
    %c1_14 = arith.constant 1 : index
    %c3_15 = arith.constant 3 : index
    %39 = memref.load %arg3[%c1_14, %c3_15] : memref<3x4xf32, #tpu.memory_space<smem>>
    %40 = vector.broadcast %39 : f32 to vector<1x256xf32>
    %41 = arith.mulf %38, %40 : vector<1x256xf32>
    %42 = arith.addf %37, %41 : vector<1x256xf32>
    %c1_16 = arith.constant 1 : index
    %43 = memref.load %arg4[%c1_16] : memref<3xf32, #tpu.memory_space<smem>>
    %44 = vector.broadcast %43 : f32 to vector<1x256xf32>
    %45 = arith.addf %42, %44 : vector<1x256xf32>
    %46 = vector.extract_strided_slice %1 {offsets = [0, 0], sizes = [1, 256], strides = [1, 1]} : vector<4x256xf32> to vector<1x256xf32>
    %c2_17 = arith.constant 2 : index
    %c0_18 = arith.constant 0 : index
    %47 = memref.load %arg3[%c2_17, %c0_18] : memref<3x4xf32, #tpu.memory_space<smem>>
    %48 = vector.broadcast %47 : f32 to vector<1x256xf32>
    %49 = arith.mulf %46, %48 : vector<1x256xf32>
    %50 = vector.extract_strided_slice %1 {offsets = [1, 0], sizes = [1, 256], strides = [1, 1]} : vector<4x256xf32> to vector<1x256xf32>
    %c2_19 = arith.constant 2 : index
    %c1_20 = arith.constant 1 : index
    %51 = memref.load %arg3[%c2_19, %c1_20] : memref<3x4xf32, #tpu.memory_space<smem>>
    %52 = vector.broadcast %51 : f32 to vector<1x256xf32>
    %53 = arith.mulf %50, %52 : vector<1x256xf32>
    %54 = arith.addf %49, %53 : vector<1x256xf32>
    %55 = vector.extract_strided_slice %1 {offsets = [2, 0], sizes = [1, 256], strides = [1, 1]} : vector<4x256xf32> to vector<1x256xf32>
    %c2_21 = arith.constant 2 : index
    %c2_22 = arith.constant 2 : index
    %56 = memref.load %arg3[%c2_21, %c2_22] : memref<3x4xf32, #tpu.memory_space<smem>>
    %57 = vector.broadcast %56 : f32 to vector<1x256xf32>
    %58 = arith.mulf %55, %57 : vector<1x256xf32>
    %59 = arith.addf %54, %58 : vector<1x256xf32>
    %60 = vector.extract_strided_slice %1 {offsets = [3, 0], sizes = [1, 256], strides = [1, 1]} : vector<4x256xf32> to vector<1x256xf32>
    %c2_23 = arith.constant 2 : index
    %c3_24 = arith.constant 3 : index
    %61 = memref.load %arg3[%c2_23, %c3_24] : memref<3x4xf32, #tpu.memory_space<smem>>
    %62 = vector.broadcast %61 : f32 to vector<1x256xf32>
    %63 = arith.mulf %60, %62 : vector<1x256xf32>
    %64 = arith.addf %59, %63 : vector<1x256xf32>
    %c2_25 = arith.constant 2 : index
    %65 = memref.load %arg4[%c2_25] : memref<3xf32, #tpu.memory_space<smem>>
    %66 = vector.broadcast %65 : f32 to vector<1x256xf32>
    %67 = arith.addf %64, %66 : vector<1x256xf32>
    %68 = tpu.concatenate %23, %45, %67 in 0 : vector<1x256xf32>, vector<1x256xf32>, vector<1x256xf32> -> vector<3x256xf32>
    %c0_26 = arith.constant 0 : index
    %c0_27 = arith.constant 0 : index
    %c0_28 = arith.constant 0 : index
    %69 = vector.load %arg5[%c0_26, %c0_27, %c0_28] : memref<1x3x256xf32, #tpu.memory_space<vmem>>, vector<1x3x256xf32>
    %70 = vector.shape_cast %69 : vector<1x3x256xf32> to vector<3x256xf32>
    %71 = vector.shape_cast %68 : vector<3x256xf32> to vector<1x3x256xf32>
    tpu.vector_store %arg5[%c0_26, %c0_27, %c0_28], %71 {strides = array<i32>} : memref<1x3x256xf32, #tpu.memory_space<vmem>>, vector<1x3x256xf32>,
    return
  }
  func.func @transform_0(%arg0: i32, %arg1: i32) -> (i32, i32, i32) {
    %c0_i32 = arith.constant 0 : i32
    %c0_i32_0 = arith.constant 0 : i32
    return %arg0, %c0_i32, %arg1 : i32, i32, i32
  }
  func.func @transform_1(%arg0: i32, %arg1: i32) -> (i32, i32) {
    %c0_i32 = arith.constant 0 : i32
    %c0_i32_0 = arith.constant 0 : i32
    %c0_i32_1 = arith.constant 0 : i32
    return %c0_i32, %c0_i32_0 : i32, i32
  }
  func.func @transform_2(%arg0: i32, %arg1: i32) -> i32 {
    %c0_i32 = arith.constant 0 : i32
    %c0_i32_0 = arith.constant 0 : i32
    return %c0_i32 : i32
  }
  func.func @transform_3(%arg0: i32, %arg1: i32) -> (i32, i32, i32) {
    %c0_i32 = arith.constant 0 : i32
    %c0_i32_0 = arith.constant 0 : i32
    return %arg0, %c0_i32, %arg1 : i32, i32, i32
  }
}

</mosaic_0001>

<bundles_post_ra>
// kernel: tpu_custom_call.1
= control target key start
LH: loop header
LB: loop body
LE: loop exit
PB: predicated region body
PF: predicated region fallthrough
CT: control target
= control target key end

     0   :  { %8 = vsyncpa [#allocation3], 0  ;;  %s895_s0 = inlined_call_operand.hbm [shape: f32[2,4,256], index: 0, kind: input, shape index: {}]   ;;  %s896_s1 = inlined_call_operand.hbm [shape: f32[3,4], index: 1, kind: input, shape index: {}]   ;;  %s897_s2 = inlined_call_operand.vmem [shape: f32[3], index: 2, kind: input, shape index: {}]   ;;  %s898_s3 = inlined_call_operand.vmem [shape: f32[2,3,256], index: 3, kind: output, shape index: {}]  }
   0x1   :  { %10 = vsyncpa [#allocation3 + $0x1], 0 }
   0x2   :  { %11 = vsyncpa [#allocation4], 0 }
   0x3   :  { %12 = vsyncpa [#allocation5], 0  ;;  %s750_s12 = smov 0   ;;  %s752_s13 = smov 0  }
   0x4   :  { %s754_s14 = smov 0   ;;  %s756_s15 = smov 0  }
   0x5   :  { %s758_s16 = smov 0   ;;  %s760_s17 = smov 0  }
   0x6 LB: > { %s496_s18 = sadd.s32 4294967295, %s725_s17   ;;  %p52_p0 = scmp.ne.s32.totalorder %s709_s13, %s705_s12  ;;  %s725_s17 = sphi %s760_s17, %s18_s17   ;;  %s721_s16 = sphi %s758_s16, %s909_s16   ;;  %s717_s15 = sphi %s756_s15, %s908_s15   ;;  %s713_s14 = sphi %s754_s14, %s907_s14   ;;  %s709_s13 = sphi %s752_s13, %s906_s13   ;;  %s705_s12 = sphi %s750_s12, %s905_s12  }
   0x7   : > { %p780_p1 = scmp.eq.s32.totalorder %s496_s18, 0  ;;  %p498_p2 = scmp.ge.s32.totalorder %s725_s17, 1 }
   0x8   : > { %p133_p3 = scmp.lt.s32.totalorder %s725_s17, 3  ;;  %s155_s24 = sshll.u32 %s897_s2, 4  ;;  %s156_s24 = int_to_ptr.vmem [resolvable:$true] %s155_s24 }
   0x9   : > { %p788_p4 = por %p780_p1, %p52_p0  ;;  %s30_s26 = sadd.s32 1, %s721_s16 }
   0xa   : > { %p792_p5 = pnand %p498_p2, %p133_p3  ;;  %p808_p8 = scmp.ge.s32.totalorder %s30_s26, 2 }
   0xb   : > { %s727_s28 = smov [#allocation6]   ;;  %s624_s4 = scalar_lea.vmem %s156_s24, 16 }
   0xc   : > { %p547_p6 = pneg %p792_p5  ;;  %p625_p9 = scmp.ne.s32.totalorder %s156_s24, %s624_s4 }
   0xd   : > { %p632_p13 = scmp.lt.s32.totalorder %s156_s24, %s156_s24  ;;  %p633_p0 = scmp.lt.s32.totalorder %s624_s4, %s624_s4 }
   0xe   : > { %p803_p7 = pnand %p547_p6, %p780_p1 }
   0xf   : > { %p634_p2 = por %p633_p0, %p632_p13 }
  0x10   : > { %550 = dma.hbm_to_smem (!%p803_p7), %s896_s1, 64, %s727_s28, [#allocation4]  }
  0x11   : > { %p626_p10 = pneg %p803_p7 }
  0x13   : > { %p627_p11 = pnand %p626_p10, %p625_p9 }
  0x15   : > { %p628_p12 = pneg %p627_p11 }
  0x17   : > { %p635_p3 = pnand %p634_p2, %p628_p12 }
  0x19   : > { %638 = shalt.err (!%p635_p3)
}
  0x1a   : > { %s728_s5 = smov [#allocation7]   ;;  %s911_s26 = smov (%p808_p8, %s30_s26), 0 }
  0x1b   : > { %553 = dma.vmem_to_smem (!%p803_p7), %s156_s24, 16, %s728_s5, [#allocation5]  }
  0x1c   : > { %s39_s6 = sadd.s32 1, %s713_s14  ;;  %p46_p6 = scmp.ne.s32.totalorder %s713_s14, %s709_s13 }
  0x1d   : > { %s34_s7 = ssub.s32 %s721_s16, %s911_s26  ;;  %p47_p9 = scmp.eq.s32.totalorder %s725_s17, 0 }
  0x1e   : > { %p37_p10 = scmp.eq.s32.totalorder %s34_s7, 0  ;;  %p560_p11 = scmp.lt.s32.totalorder %s725_s17, 2 }
  0x1f   : > { %p48_p12 = por %p47_p9, %p46_p6  ;;  %s166_s8 = sand.u32 1, %s713_s14  }
  0x20   : > { %s834_s9 = scalar_select %p37_p10, %s713_s14, %s39_s6  }
  0x21   : > { %s502_s10 = sshll.u32 %s166_s8, 3  ;;  %s535_s11 = sshll.u32 %s721_s16, 7 }
  0x22   : > { %s178_s22 = scalar_lea.hbm %s895_s0, %s535_s11  ;;  %s170_s23 = scalar_lea.vmem [#allocation2], %s502_s10 }
  0x23   : > { %s180_s24 = sshll.u32 %s170_s23, 4  ;;  %p840_p7 = pnand %p560_p11, %p48_p12  ;;  %s181_s24 = int_to_ptr.vmem [resolvable:$true] %s180_s24 }
  0x24   : > { %s167_s27 = scalar_lea.sflag [#allocation3], %s166_s8  ;;  %s652_s28 = scalar_lea.vmem %s181_s24, 128 }
  0x25   : > { %p641_p8 = pneg %p840_p7  ;;  %p653_p13 = scmp.ne.s32.totalorder %s181_s24, %s652_s28 }
  0x26   : > { %s729_s29 = smov [#allocation2]  }
  0x27   : > { %p655_p0 = pnand %p653_p13, %p641_p8  ;;  %s657_s30 = sshll.u32 %s729_s29, 4  ;;  %s658_s30 = int_to_ptr.vmem [resolvable:$false] %s657_s30 }
  0x28   : > { %s659_s4 = scalar_lea.vmem %s658_s30, 256  ;;  %p660_p3 = scmp.lt.s32.totalorder %s181_s24, %s658_s30 }
  0x29   : > { %p656_p2 = pneg %p655_p0  ;;  %p661_p6 = scmp.lt.s32.totalorder %s659_s4, %s652_s28 }
  0x2b   : > { %p662_p9 = por %p661_p6, %p660_p3 }
  0x2d   : > { %p663_p10 = pnand %p662_p9, %p656_p2 }
  0x2f   : > { %666 = shalt.err (!%p663_p10)
}
  0x30   : > { %557 = dma.hbm_to_vmem [thread:$0]  (!%p840_p7), %s178_s22, 128, %s181_s24, %s167_s27  }
  0x31   : > { %189 = sbr.rel (%p792_p5) target bundleno = 97 (0x61), region = 32  ;;  %s191_s5 = sand.u32 (!%p792_p5), 1, %s709_s13  }
  0x32   : > { %s506_s6 = sshll.u32 (!%p792_p5), %s191_s5, 3  ;;  %s192_s7 = scalar_lea.sflag (!%p792_p5), [#allocation3], %s191_s5 }
  0x33   : > { %s195_s8 = scalar_lea.vmem (!%p792_p5), [#allocation2], %s506_s6 }
  0x36   : > { %692 = dma.done.wait (%p788_p4), %s192_s7, 128  }
  0x37   : > { %694 = vsyncadd (%p788_p4), %s192_s7, 4294967168 }
  0x38   : > { %696 = dma.done.wait (%p780_p1), [#allocation4], 64  }
  0x39   : > { %698 = vsyncadd (%p780_p1), [#allocation4], 4294967232 }
  0x3a   : > { %700 = dma.done.wait (%p780_p1), [#allocation5], 16  }
  0x3b   : > { %702 = vsyncadd (%p780_p1), [#allocation5], 4294967280 }
  0x3c   : > { %208 = sfence }
  0x3d   : > { %s243_s21 = sld [smem:[#allocation6]]  ;;  %v242_v0 = vld [vmem:[%s195_s8] sm:$0xff]  ;;  %v334_v17 = vlaneseq  ;;  %p233_p1 = scmp.lt.s32.totalorder %s717_s15, 1  ;;  %vm366_vm0 = vcmask 1040384   ;;  %vm369_vm1 = vcmask 1041408  }
  0x3e   : > { %s511_s10 = sld [smem:[#allocation6 + $0x1]] }
  0x3f   : > { %s513_s11 = sld [smem:[#allocation6 + $0x2]]  ;;  %v335_v29 = vshrl.u32 %v334_v17, 7  ;;  %s913_s15 = smov (!%p233_p1, %s717_s15), 1 }
  0x40   : > { %s515_s12 = sld [smem:[#allocation6 + $0x3]]  ;;  %s536_s4 = sshll.u32 %s913_s15, 3 }
  0x41   : > { %s863_s20 = sld [smem:[#allocation7]]  ;;  %v336_v44 = vsub.s32 0, %v335_v29  ;;  %v340_v45 = vsub.s32 4, %v335_v29  ;;  %s240_s7 = scalar_lea.vmem %s898_s3, %s536_s4 }
  0x42   : > { %s517_s18 = sld [smem:[#allocation6 + $0x80]] }
  0x43   : > { %v244_v1 = vstv %s243_s21  ;;  %s518_s22 = sld [smem:[#allocation6 + $0x81]] }
  0x44   : > { %v247_v2 = vstv %s511_s10  ;;  %v245_v3 = vmul.f32 %v244_v1, %v242_v0  ;;  %s520_s23 = sld [smem:[#allocation6 + $0x82]] }
  0x45   : > { %v248_v4 = vmul.f32 %v247_v2, %v242_v0  ;;  %v255_v5 = vstv %s513_s11  ;;  %s522_s24 = sld [smem:[#allocation6 + $0x83]] }
  0x46   : > { %v256_v7 = vmul.f32 %v255_v5, %v242_v0  ;;  %v263_v8 = vstv %s515_s12  ;;  %s865_s19 = sld [smem:[#allocation7 + $0x1]] }
  0x47   : > { %v512_v6 = vrot.slane %v248_v4, 9  ;;  %v264_v9 = vmul.f32 %v263_v8, %v242_v0  ;;  %s525_s25 = sld [smem:[#allocation6 + $0x100]]  ;;  %v271_v26 = vstv %s863_s20 }
  0x48   : > { %v514_v11 = vrot.slane %v256_v7, 10  ;;  %v274_v12 = vstv %s517_s18  ;;  %s526_s27 = sld [smem:[#allocation6 + $0x101]] }
  0x49   : > { %v253_v10 = vadd.f32 %v512_v6, %v245_v3  ;;  %v277_v13 = vstv %s518_s22  ;;  %s528_s28 = sld [smem:[#allocation6 + $0x102]]  ;;  %v275_v14 = vmul.f32 %v274_v12, %v242_v0  ;;  %v516_v19 = vrot.slane %v264_v9, 11 }
  0x4a   : > { %v278_v15 = vmul.f32 %v277_v13, %v242_v0  ;;  %v285_v16 = vstv %s520_s23  ;;  %s530_s29 = sld [smem:[#allocation6 + $0x103]] }
  0x4b   : > { %v261_v18 = vadd.f32 %v514_v11, %v253_v10  ;;  %v286_v20 = vmul.f32 %v285_v16, %v242_v0  ;;  %v293_v21 = vstv %s522_s24  ;;  %s868_s30 = sld [smem:[#allocation7 + $0x2]] }
  0x4c   : > { %v519_v22 = vrot.slane %v278_v15, 9  ;;  %v294_v23 = vmul.f32 %v293_v21, %v242_v0  ;;  %v301_v38 = vstv %s865_s19 }
  0x4d   : > { %v521_v24 = vrot.slane %v286_v20, 10  ;;  %v304_v25 = vstv %s525_s25  ;;  %v269_v30 = vadd.f32 %v516_v19, %v261_v18 }
  0x4e   : > { %v283_v27 = vadd.f32 %v519_v22, %v275_v14  ;;  %v523_v28 = vrot.slane %v294_v23, 11  ;;  %v305_v31 = vmul.f32 %v304_v25, %v242_v0  ;;  %v307_v32 = vstv %s526_s27 }
  0x4f   : > { %v315_v33 = vstv %s528_s28  ;;  %v308_v35 = vmul.f32 %v307_v32, %v242_v0  ;;  %v272_v43 = vadd.f32 %v271_v26, %v269_v30 }
  0x50   : > { %v291_v34 = vadd.f32 %v521_v24, %v283_v27  ;;  %v316_v36 = vmul.f32 %v315_v33, %v242_v0  ;;  %v323_v37 = vstv %s530_s29 }
  0x51   : > { %v324_v39 = vmul.f32 %v323_v37, %v242_v0  ;;  %v527_v41 = vrot.slane %v308_v35, 9  ;;  %v331_v50 = vstv %s868_s30  ;;  %v337_v51 = vrot.slane %v272_v43, %v336_v44 }
  0x52   : > { %v299_v40 = vadd.f32 %v523_v28, %v291_v34  ;;  %v529_v42 = vrot.slane %v316_v36, 10  ;;  %v341_v52 = vrot.slane %v272_v43, %v340_v45 }
  0x53   : > { %v313_v47 = vadd.f32 %v527_v41, %v305_v31  ;;  %v531_v48 = vrot.slane %v324_v39, 11 }
  0x54   : > { %v302_v46 = vadd.f32 %v301_v38, %v299_v40 }
  0x55   : > { %v321_v49 = vadd.f32 %v529_v42, %v313_v47 }
  0x56   : > { %v348_v53 = vrot.slane %v302_v46, %v336_v44  ;;  %v352_v54 = vrot.slane %v302_v46, %v340_v45 }
  0x57   : > { %v329_v55 = vadd.f32 %v531_v48, %v321_v49 }
  0x58   : > { %v367_v57 = vsel %vm366_vm0, %v337_v51, %v348_v53  ;;  %v368_v58 = vsel %vm366_vm0, %v341_v52, %v352_v54 }
  0x59   : > { %v332_v56 = vadd.f32 %v331_v50, %v329_v55 }
  0x5b   : > { %v359_v59 = vrot.slane %v332_v56, %v336_v44  ;;  %v363_v60 = vrot.slane %v332_v56, %v340_v45 }
  0x5d   : > { %v370_v61 = vsel %vm369_vm1, %v367_v57, %v359_v59  ;;  %v371_v62 = vsel %vm369_vm1, %v368_v58, %v363_v60 }
  0x5e   : > { %v374_v63 = vcombine.low %v370_v61, %v371_v62 }
  0x60   : > { %376 = vst [vmem:[%s240_s7] sm:$0x77] %v374_v63 }
  0x61 PF: > { %s18_s17 = sadd.s32 1, %s725_s17   ;;  %s905_s12 = smov %s709_s13 }
  0x62   : > { %p15_p4 = scmp.ge.s32.totalorder %s18_s17, 4   ;;  %s906_s13 = smov %s713_s14 }
  0x63   : > { %s907_s14 = smov %s834_s9  ;;  %s908_s15 = smov %s721_s16 }
  0x64   : > { %s909_s16 = smov %s911_s26  ;;  %17 = sbr.rel (!%p15_p4) target bundleno = 6 (0x6), region = 82 }
  0x69   :  { %407 = vsyncpa [#allocation3], 1 }
  0x6a   :  { %409 = vsyncpa [#allocation3 + $0x1], 1 }
  0x6b   :  { %410 = vsyncpa [#allocation4], 1 }
  0x6c   :  { %412 = vsyncpa [#allocation4 + $0x1], 1 }
  0x6d   :  { %413 = vsyncpa [#allocation5], 1 }
  0x6e   :  { %415 = vsyncpa [#allocation5 + $0x1], 1 }

</bundles_post_ra>
